<compile_context>
chip_gen: v5e
topology: v5e:2x2
jax: 0.10.0
libtpu: 0.0.40
codegen_flags: <defaults>
</compile_context>

<pallas_src>
import functools

import jax
import jax.numpy as jnp
from jax.experimental import pallas as pl
from jax.experimental.pallas import tpu as pltpu

LANE = 128
MAX_TILE_ROWS = 8192   # 8192 x 128 f32 block = 4 MiB per operand
CHUNK_ROWS = 512       # rows per inner accumulation chunk (256 KiB f32)


def _num_tensorcores() -> int:
    """Number of TensorCores a 'parallel' grid axis can shard across."""
    try:
        kind = jax.devices()[0].device_kind.lower()
    except Exception:  # pragma: no cover - defensive
        return 1
    # Single-TensorCore chips.
    if "lite" in kind or "v5e" in kind or "v6e" in kind or "v6" in kind:
        return 1
    # Megacore / dual-TC chips (v4, v5p, v7x).
    for tag in ("v4", "v5p", "v5", "v7"):
        if tag in kind:
            return 2
    return 1


def _dice_kernel(n_ref, x_ref, t_ref, acc_ref, *,
                 tiles_per_core, num_tiles, tile_rows, chunk_rows):
    """Accumulate [intersection, sum(sigmoid(x)), sum(targets)] partials.

    acc_ref is the (1, 3, LANE) f32 output block of the current core; it stays
    resident across the sequential reduction axis (same block index for all i).
    """
    c = pl.program_id(0)            # parallel (core) axis
    i = pl.program_id(1)            # sequential reduction axis
    tid = c * tiles_per_core + i    # logical tile id over the flattened input

    @pl.when(i == 0)
    def _init():
        acc_ref[...] = jnp.zeros_like(acc_ref)

    n = n_ref[0]
    tile_elems = tile_rows * LANE
    tile_base = tid * tile_elems

    num_full_chunks = tile_rows // chunk_rows
    rem_rows = tile_rows - num_full_chunks * chunk_rows

    def chunk_sums(r0, nrows, masked):
        # Load a (nrows, LANE) chunk, cast in-kernel (keeps HBM traffic narrow
        # for bf16 logits / int8 targets) and reduce to (1, LANE) partials.
        x = x_ref[pl.ds(r0, nrows), :].astype(jnp.float32)
        t = t_ref[pl.ds(r0, nrows), :].astype(jnp.float32)
        s = jax.nn.sigmoid(x)
        if masked:
            # Only tiles overlapping the ragged end (or over-range work items
            # from the core split) reach here: mask by global element index.
            row = jax.lax.broadcasted_iota(jnp.int32, (nrows, LANE), 0)
            col = jax.lax.broadcasted_iota(jnp.int32, (nrows, LANE), 1)
            gidx = tile_base + (r0 + row) * LANE + col
            valid = gidx < n
            s = jnp.where(valid, s, 0.0)
            t = jnp.where(valid, t, 0.0)
        pi = jnp.sum(s * t, axis=0, keepdims=True)
        ps = jnp.sum(s, axis=0, keepdims=True)
        pt = jnp.sum(t, axis=0, keepdims=True)
        return pi, ps, pt

    def run(masked):
        zero = jnp.zeros((1, LANE), jnp.float32)
        acc_i, acc_s, acc_t = zero, zero, zero

        def body(j, carry):
            ai, as_, at = carry
            r0 = pl.multiple_of(j * chunk_rows, chunk_rows)
            pi, ps, pt = chunk_sums(r0, chunk_rows, masked)
            return ai + pi, as_ + ps, at + pt

        if num_full_chunks > 0:
            acc_i, acc_s, acc_t = jax.lax.fori_loop(
                0, num_full_chunks, body, (acc_i, acc_s, acc_t),
                unroll=min(4, num_full_chunks))
        if rem_rows > 0:
            pi, ps, pt = chunk_sums(num_full_chunks * chunk_rows, rem_rows,
                                    masked)
            acc_i, acc_s, acc_t = acc_i + pi, acc_s + ps, acc_t + pt

        update = jnp.concatenate([acc_i, acc_s, acc_t], axis=0)  # (3, LANE)
        acc_ref[...] += update[None, :, :]

    is_full = tile_base + tile_elems <= n

    @pl.when(is_full)
    def _full_tile():
        run(masked=False)

    @pl.when(jnp.logical_not(is_full))
    def _tail_tile():
        run(masked=True)


def dice_loss_binary(inputs, targets, smooth: float = 1e-6):
    """Pallas-TPU binary Dice loss matching PyTorch DiceLossBinary.forward."""
    x = jnp.asarray(inputs).reshape(-1)
    t = jnp.asarray(targets).reshape(-1)
    # Keep narrow dtypes narrow (kernel is HBM-bandwidth bound); the f32 cast
    # happens in-kernel.  Bool is shipped as int8.
    if x.dtype == jnp.bool_:
        x = x.astype(jnp.int8)
    if t.dtype == jnp.bool_:
        t = t.astype(jnp.int8)

    n = x.shape[0]
    rem = n % LANE

    tail_inter = jnp.float32(0.0)
    tail_s = jnp.float32(0.0)
    tail_t = jnp.float32(0.0)
    if rem:
        # <128-element ragged tail reduced with plain JAX (negligible work);
        # the kernel only ever sees the lane-aligned prefix.
        tx = x[n - rem:].astype(jnp.float32)
        tt = t[n - rem:].astype(jnp.float32)
        ts = jax.nn.sigmoid(tx)
        tail_inter = jnp.sum(ts * tt)
        tail_s = jnp.sum(ts)
        tail_t = jnp.sum(tt)
        x = x[: n - rem]
        t = t[: n - rem]

    n_main = n - rem
    if n_main == 0:
        union = tail_s + tail_t
        dice = (2.0 * tail_inter + smooth) / (union + smooth)
        return 1.0 - dice

    rows = n_main // LANE
    x2 = x.reshape(rows, LANE)
    t2 = t.reshape(rows, LANE)

    tile_rows = min(MAX_TILE_ROWS, rows)
    chunk_rows = min(CHUNK_ROWS, tile_rows)
    num_tiles = pl.cdiv(rows, tile_rows)
    num_cores = _num_tensorcores() if num_tiles > 1 else 1
    num_cores = max(1, num_cores)
    tiles_per_core = pl.cdiv(num_tiles, num_cores)

    kernel = functools.partial(
        _dice_kernel,
        tiles_per_core=tiles_per_core, num_tiles=num_tiles,
        tile_rows=tile_rows, chunk_rows=chunk_rows)

    def in_map(c, i, n_ref):
        # Clamp so over-range work items (ragged core split) read a real
        # block; their contribution is fully masked out inside the kernel.
        return (jnp.minimum(c * tiles_per_core + i, num_tiles - 1), 0)

    partials = pl.pallas_call(
        kernel,
        out_shape=jax.ShapeDtypeStruct((num_cores, 3, LANE), jnp.float32),
        grid_spec=pltpu.PrefetchScalarGridSpec(
            num_scalar_prefetch=1,
            grid=(num_cores, tiles_per_core),
            in_specs=[
                pl.BlockSpec((tile_rows, LANE), in_map),
                pl.BlockSpec((tile_rows, LANE), in_map),
            ],
            out_specs=pl.BlockSpec(
                (1, 3, LANE), lambda c, i, n_ref: (c, 0, 0)),
        ),
        compiler_params=pltpu.CompilerParams(
            dimension_semantics=("parallel", "arbitrary"),
            vmem_limit_bytes=48 * 1024 * 1024,
        ),
    )(jnp.array([n_main], dtype=jnp.int32), x2, t2)

    # Combine per-core lane partials, fold in the ragged tail, apply dice.
    sums = partials.sum(axis=(0, 2))
    intersection = sums[0] + tail_inter
    union = sums[1] + sums[2] + tail_s + tail_t
    dice = (2.0 * intersection + smooth) / (union + smooth)
    return 1.0 - dice


def _reference(inputs, targets, smooth=1e-6):
    s = jax.nn.sigmoid(inputs.reshape(-1).astype(jnp.float32))
    t = targets.reshape(-1).astype(jnp.float32)
    inter = jnp.sum(s * t)
    union = jnp.sum(s) + jnp.sum(t)
    return 1.0 - (2.0 * inter + smooth) / (union + smooth)


if __name__ == "__main__":
    key = jax.random.PRNGKey(0)
    k1, k2 = jax.random.split(key)

    # Small NCHW-like shapes (segmentation logits / binary masks).
    x = jax.random.normal(k1, (2, 4, 16, 16), dtype=jnp.float32)            # logits
    y = (jax.random.uniform(k2, (2, 4, 16, 16)) > 0.5).astype(jnp.float32)  # targets

    loss = dice_loss_binary(x, y)
    loss = jax.block_until_ready(loss)

    ref = _reference(x, y)
    assert jnp.allclose(loss, ref, atol=1e-5, rtol=1e-5), (loss, ref)

    print("KERNEL_OK")
</pallas_src>

<mosaic_0001>
module attributes {stable_mosaic.version = 11 : i64} {
  func.func @_dice_kernel(%arg0: i32, %arg1: i32, %arg2: memref<1xi32, #tpu.memory_space<smem>>, %arg3: memref<16x128xf32, #tpu.memory_space<vmem>>, %arg4: memref<16x128xf32, #tpu.memory_space<vmem>>, %arg5: memref<1x3x128xf32, #tpu.memory_space<vmem>>) attributes {dimension_semantics = [#tpu.dimension_semantics<parallel>, #tpu.dimension_semantics<arbitrary>], iteration_bounds = array<i64: 1, 1>, scalar_prefetch = 1 : i64, scratch_operands = 0 : i64, tpu.core_type = #tpu.core_type<tc>, window_params = [{transform_indices = @transform_0, window_bounds = array<i64: 16, 128>}, {transform_indices = @transform_1, window_bounds = array<i64: 16, 128>}, {transform_indices = @transform_2, window_bounds = array<i64: 1, 3, 128>}]} {
    %c1_i32 = arith.constant 1 : i32
    %0 = arith.muli %arg0, %c1_i32 : i32
    %1 = arith.addi %0, %arg1 : i32
    %c0_i32 = arith.constant 0 : i32
    %2 = arith.cmpi eq, %arg1, %c0_i32 : i32
    %3 = arith.extui %2 : i1 to i32
    %c0_i32_0 = arith.constant 0 : i32
    %4 = arith.cmpi ne, %3, %c0_i32_0 : i32
    scf.if %4 {
      %cst = arith.constant 0.000000e+00 : f32
      %14 = vector.broadcast %cst : f32 to vector<1x3x128xf32>
      %c0_4 = arith.constant 0 : index
      %c0_5 = arith.constant 0 : index
      %c0_6 = arith.constant 0 : index
      %15 = vector.load %arg5[%c0_4, %c0_5, %c0_6] : memref<1x3x128xf32, #tpu.memory_space<vmem>>, vector<1x3x128xf32>
      tpu.vector_store %arg5[%c0_4, %c0_5, %c0_6], %14 {strides = array<i32>} : memref<1x3x128xf32, #tpu.memory_space<vmem>>, vector<1x3x128xf32>,
    } else {
    }
    %c0 = arith.constant 0 : index
    %5 = memref.load %arg2[%c0] : memref<1xi32, #tpu.memory_space<smem>>
    %c2048_i32 = arith.constant 2048 : i32
    %6 = arith.muli %1, %c2048_i32 : i32
    %c2048_i32_1 = arith.constant 2048 : i32
    %7 = arith.addi %6, %c2048_i32_1 : i32
    %8 = arith.cmpi sle, %7, %5 : i32
    %9 = arith.extui %8 : i1 to i32
    %c0_i32_2 = arith.constant 0 : i32
    %10 = arith.cmpi ne, %9, %c0_i32_2 : i32
    scf.if %10 {
      %cst = arith.constant 0.000000e+00 : f32
      %14 = vector.broadcast %cst : f32 to vector<1x128xf32>
      %c0_i32_4 = arith.constant 0 : i32
      %c16_i32 = arith.constant 16 : i32
      %15 = arith.muli %c0_i32_4, %c16_i32 : i32
      %16 = tpu.assume_multiple %15, 16 : i32
      %17 = arith.index_cast %16 : i32 to index
      %c0_5 = arith.constant 0 : index
      %18 = vector.load %arg3[%17, %c0_5] : memref<16x128xf32, #tpu.memory_space<vmem>>, vector<16x128xf32>
      %19 = arith.index_cast %16 : i32 to index
      %c0_6 = arith.constant 0 : index
      %20 = vector.load %arg4[%19, %c0_6] : memref<16x128xf32, #tpu.memory_space<vmem>>, vector<16x128xf32>
      %21 = arith.negf %18 : vector<16x128xf32>
      %22 = math.exp %21 : vector<16x128xf32>
      %cst_7 = arith.constant 1.000000e+00 : f32
      %23 = vector.broadcast %cst_7 : f32 to vector<16x128xf32>
      %24 = arith.addf %23, %22 : vector<16x128xf32>
      %25 = arith.divf %23, %24 : vector<16x128xf32>
      %26 = arith.mulf %25, %20 : vector<16x128xf32>
      %cst_8 = arith.constant dense<0.000000e+00> : vector<128xf32>
      %27 = vector.multi_reduction <add>, %26, %cst_8 [0] : vector<16x128xf32> to vector<128xf32>
      %28 = vector.shape_cast %27 : vector<128xf32> to vector<1x128xf32>
      %cst_9 = arith.constant dense<0.000000e+00> : vector<128xf32>
      %29 = vector.multi_reduction <add>, %25, %cst_9 [0] : vector<16x128xf32> to vector<128xf32>
      %30 = vector.shape_cast %29 : vector<128xf32> to vector<1x128xf32>
      %cst_10 = arith.constant dense<0.000000e+00> : vector<128xf32>
      %31 = vector.multi_reduction <add>, %20, %cst_10 [0] : vector<16x128xf32> to vector<128xf32>
      %32 = vector.shape_cast %31 : vector<128xf32> to vector<1x128xf32>
      %33 = arith.addf %14, %28 : vector<1x128xf32>
      %34 = arith.addf %14, %30 : vector<1x128xf32>
      %35 = arith.addf %14, %32 : vector<1x128xf32>
      %c1_i32_11 = arith.constant 1 : i32
      %36 = tpu.concatenate %33, %34, %35 in 0 : vector<1x128xf32>, vector<1x128xf32>, vector<1x128xf32> -> vector<3x128xf32>
      %c0_12 = arith.constant 0 : index
      %c0_13 = arith.constant 0 : index
      %c0_14 = arith.constant 0 : index
      %37 = vector.load %arg5[%c0_12, %c0_13, %c0_14] : memref<1x3x128xf32, #tpu.memory_space<vmem>>, vector<1x3x128xf32>
      %38 = vector.shape_cast %36 : vector<3x128xf32> to vector<1x3x128xf32>
      %39 = arith.addf %37, %38 : vector<1x3x128xf32>
      %c0_15 = arith.constant 0 : index
      %c0_16 = arith.constant 0 : index
      %c0_17 = arith.constant 0 : index
      %40 = vector.load %arg5[%c0_15, %c0_16, %c0_17] : memref<1x3x128xf32, #tpu.memory_space<vmem>>, vector<1x3x128xf32>
      tpu.vector_store %arg5[%c0_15, %c0_16, %c0_17], %39 {strides = array<i32>} : memref<1x3x128xf32, #tpu.memory_space<vmem>>, vector<1x3x128xf32>,
    } else {
    }
    %true = arith.constant true
    %11 = arith.xori %8, %true : i1
    %12 = arith.extui %11 : i1 to i32
    %c0_i32_3 = arith.constant 0 : i32
    %13 = arith.cmpi ne, %12, %c0_i32_3 : i32
    scf.if %13 {
      %cst = arith.constant 0.000000e+00 : f32
      %14 = vector.broadcast %cst : f32 to vector<1x128xf32>
      %c0_i32_4 = arith.constant 0 : i32
      %c16_i32 = arith.constant 16 : i32
      %15 = arith.muli %c0_i32_4, %c16_i32 : i32
      %16 = tpu.assume_multiple %15, 16 : i32
      %17 = arith.index_cast %16 : i32 to index
      %c0_5 = arith.constant 0 : index
      %18 = vector.load %arg3[%17, %c0_5] : memref<16x128xf32, #tpu.memory_space<vmem>>, vector<16x128xf32>
      %19 = arith.index_cast %16 : i32 to index
      %c0_6 = arith.constant 0 : index
      %20 = vector.load %arg4[%19, %c0_6] : memref<16x128xf32, #tpu.memory_space<vmem>>, vector<16x128xf32>
      %21 = arith.negf %18 : vector<16x128xf32>
      %22 = math.exp %21 : vector<16x128xf32>
      %cst_7 = arith.constant 1.000000e+00 : f32
      %23 = vector.broadcast %cst_7 : f32 to vector<16x128xf32>
      %24 = arith.addf %23, %22 : vector<16x128xf32>
      %25 = arith.divf %23, %24 : vector<16x128xf32>
      %26 = tpu.iota {dimensions = array<i32: 0>} : vector<16x128xi32>
      %27 = tpu.iota {dimensions = array<i32: 1>} : vector<16x128xi32>
      %28 = vector.broadcast %16 : i32 to vector<16x128xi32>
      %29 = arith.addi %28, %26 : vector<16x128xi32>
      %c128_i32 = arith.constant 128 : i32
      %30 = vector.broadcast %c128_i32 : i32 to vector<16x128xi32>
      %31 = arith.muli %29, %30 : vector<16x128xi32>
      %32 = vector.broadcast %6 : i32 to vector<16x128xi32>
      %33 = arith.addi %32, %31 : vector<16x128xi32>
      %34 = arith.addi %33, %27 : vector<16x128xi32>
      %35 = vector.broadcast %5 : i32 to vector<16x128xi32>
      %36 = arith.cmpi slt, %34, %35 : vector<16x128xi32>
      %cst_8 = arith.constant 0.000000e+00 : f32
      %37 = vector.broadcast %cst_8 : f32 to vector<16x128xf32>
      %38 = arith.select %36, %25, %37 : vector<16x128xi1>, vector<16x128xf32>
      %cst_9 = arith.constant 0.000000e+00 : f32
      %39 = vector.broadcast %cst_9 : f32 to vector<16x128xf32>
      %40 = arith.select %36, %20, %39 : vector<16x128xi1>, vector<16x128xf32>
      %41 = arith.mulf %38, %40 : vector<16x128xf32>
      %cst_10 = arith.constant dense<0.000000e+00> : vector<128xf32>
      %42 = vector.multi_reduction <add>, %41, %cst_10 [0] : vector<16x128xf32> to vector<128xf32>
      %43 = vector.shape_cast %42 : vector<128xf32> to vector<1x128xf32>
      %cst_11 = arith.constant dense<0.000000e+00> : vector<128xf32>
      %44 = vector.multi_reduction <add>, %38, %cst_11 [0] : vector<16x128xf32> to vector<128xf32>
      %45 = vector.shape_cast %44 : vector<128xf32> to vector<1x128xf32>
      %cst_12 = arith.constant dense<0.000000e+00> : vector<128xf32>
      %46 = vector.multi_reduction <add>, %40, %cst_12 [0] : vector<16x128xf32> to vector<128xf32>
      %47 = vector.shape_cast %46 : vector<128xf32> to vector<1x128xf32>
      %48 = arith.addf %14, %43 : vector<1x128xf32>
      %49 = arith.addf %14, %45 : vector<1x128xf32>
      %50 = arith.addf %14, %47 : vector<1x128xf32>
      %c1_i32_13 = arith.constant 1 : i32
      %51 = tpu.concatenate %48, %49, %50 in 0 : vector<1x128xf32>, vector<1x128xf32>, vector<1x128xf32> -> vector<3x128xf32>
      %c0_14 = arith.constant 0 : index
      %c0_15 = arith.constant 0 : index
      %c0_16 = arith.constant 0 : index
      %52 = vector.load %arg5[%c0_14, %c0_15, %c0_16] : memref<1x3x128xf32, #tpu.memory_space<vmem>>, vector<1x3x128xf32>
      %53 = vector.shape_cast %51 : vector<3x128xf32> to vector<1x3x128xf32>
      %54 = arith.addf %52, %53 : vector<1x3x128xf32>
      %c0_17 = arith.constant 0 : index
      %c0_18 = arith.constant 0 : index
      %c0_19 = arith.constant 0 : index
      %55 = vector.load %arg5[%c0_17, %c0_18, %c0_19] : memref<1x3x128xf32, #tpu.memory_space<vmem>>, vector<1x3x128xf32>
      tpu.vector_store %arg5[%c0_17, %c0_18, %c0_19], %54 {strides = array<i32>} : memref<1x3x128xf32, #tpu.memory_space<vmem>>, vector<1x3x128xf32>,
    } else {
    }
    return
  }
  func.func @transform_0(%arg0: i32, %arg1: i32, %arg2: memref<1xi32, #tpu.memory_space<smem>>) -> (i32, i32) {
    %c1_i32 = arith.constant 1 : i32
    %0 = arith.muli %arg0, %c1_i32 : i32
    %1 = arith.addi %0, %arg1 : i32
    %c0_i32 = arith.constant 0 : i32
    %2 = arith.minsi %1, %c0_i32 : i32
    %c0_i32_0 = arith.constant 0 : i32
    %c0_i32_1 = arith.constant 0 : i32
    return %2, %c0_i32_0 : i32, i32
  }
  func.func @transform_1(%arg0: i32, %arg1: i32, %arg2: memref<1xi32, #tpu.memory_space<smem>>) -> (i32, i32) {
    %c1_i32 = arith.constant 1 : i32
    %0 = arith.muli %arg0, %c1_i32 : i32
    %1 = arith.addi %0, %arg1 : i32
    %c0_i32 = arith.constant 0 : i32
    %2 = arith.minsi %1, %c0_i32 : i32
    %c0_i32_0 = arith.constant 0 : i32
    %c0_i32_1 = arith.constant 0 : i32
    return %2, %c0_i32_0 : i32, i32
  }
  func.func @transform_2(%arg0: i32, %arg1: i32, %arg2: memref<1xi32, #tpu.memory_space<smem>>) -> (i32, i32, i32) {
    %c0_i32 = arith.constant 0 : i32
    %c0_i32_0 = arith.constant 0 : i32
    %c0_i32_1 = arith.constant 0 : i32
    return %arg0, %c0_i32, %c0_i32_0 : i32, i32, i32
  }
}

</mosaic_0001>

<bundles_post_ra>
// kernel: tpu_custom_call.1
= control target key start
LH: loop header
LB: loop body
LE: loop exit
PB: predicated region body
PF: predicated region fallthrough
CT: control target
= control target key end

     0   :  { %9 = vsyncpa [#allocation5], 0  ;;  %s416_s0 = inlined_call_operand.<no memory space> [shape: s32[1], index: 0, kind: input, shape index: {}]   ;;  %s417_s1 = inlined_call_operand.hbm [shape: f32[16,128], index: 1, kind: input, shape index: {}]   ;;  %s418_s2 = inlined_call_operand.hbm [shape: f32[16,128], index: 2, kind: input, shape index: {}]   ;;  %s419_s3 = inlined_call_operand.vmem [shape: f32[1,3,128], index: 3, kind: output, shape index: {}]  }
   0x1   :  { %s21_s14 = sshll.u32 %s417_s1, 4  ;;  %s22_s14 = int_to_ptr.hbm [resolvable:$true] %s21_s14 }
   0x2   :  { %10 = vsyncpa [#allocation7], 0  ;;  %s345_s15 = smov [#allocation4]   ;;  %s40_s19 = sshll.u32 %s418_s2, 4  ;;  %s41_s19 = int_to_ptr.hbm [resolvable:$true] %s40_s19 }
   0x3   :  { %s23_s16 = sshll.u32 %s345_s15, 4  ;;  %s346_s20 = smov 128   ;;  %s24_s16 = int_to_ptr.vmem [resolvable:$true] %s23_s16 }
   0x4   :  { %s347_s21 = smov 8   ;;  %s348_s22 = smov [#allocation6]  }
   0x5   :  { %29 = dma.hbm_to_vmem [thread:$0]  %s22_s14, 256, %s24_s16, [#allocation5], %s346_s20, %s346_s20, %s347_s21  }
   0x6   :  { %s42_s23 = sshll.u32 %s348_s22, 4  ;;  %s43_s23 = int_to_ptr.vmem [resolvable:$true] %s42_s23 }
   0x7   :  { %48 = dma.hbm_to_vmem [thread:$0]  %s41_s19, 256, %s43_s23, [#allocation7], %s346_s20, %s346_s20, %s347_s21  }
   0x8   :  { %341 = dma.done.wait [#allocation5], 256  }
   0x9   :  { %342 = vsyncadd [#allocation5], 4294967040 }
   0xa   :  { %343 = dma.done.wait [#allocation7], 256  }
   0xb   :  { %344 = vsyncadd [#allocation7], 4294967040  ;;  %v349_v0 = vmov 0.0   ;;  %p265_p0 = scmp.lt.s32.totalorder %s416_s0, 2048 }
   0xc   :  { %70 = vst [vmem:[%s419_s3] sm:$0x7] %v349_v0 }
   0xd   :  { %77 = sbr.rel (%p265_p0) target bundleno = 69 (0x45), region = 25 }
  0x12   :  { %v78_v1 = vld [vmem:[#allocation4] sm:$0xff]  ;;  %v79_v2 = vld [vmem:[#allocation4 + $0x8] sm:$0xff]  ;;  %v80_v10 = vld [vmem:[#allocation6] sm:$0xff]  ;;  %vm146_vm8 = vcmask 1040384   ;;  %vm148_vm9 = vcmask 1041408  }
  0x13   :  { %v266_v3 = vmul.f32 -1.442695, %v78_v1  ;;  %v267_v4 = vmul.f32 -1.442695, %v79_v2  ;;  %v81_v11 = vld [vmem:[#allocation6 + $0x8] sm:$0xff] }
  0x14   :  { %v136_v14 = vadd.f32 %v81_v11, %v80_v10  ;;  %v150_v54 = vld [vmem:[%s419_s3] sm:$0x7] }
  0x15   :  { %277 = vpow2.f32 %v266_v3 }
  0x16   :  { %279 = vpow2.f32 %v267_v4  ;;  %v137_v23 = vrot.slane %v136_v14, 4 }
  0x18   :  { %v138_v30 = vadd.f32 %v137_v23, %v136_v14 }
  0x1a   :  { %v139_v37 = vrot.slane %v138_v30, 2 }
  0x1b   :  { %v278_v5 = vpop.eup %277 }
  0x1c   :  { %v280_v6 = vpop.eup %279  ;;  %v88_v7 = vadd.f32 1.0, %v278_v5  ;;  %v140_v42 = vadd.f32 %v139_v37, %v138_v30 }
  0x1d   :  { %v89_v8 = vadd.f32 1.0, %v280_v6 }
  0x1e   :  { %281 = vrcp.f32 %v88_v7  ;;  %vm95_vm0 = vweird.f32 %v88_v7  ;;  %v101_v15 = vand.u32 2147483648, %v88_v7  ;;  %v99_v18 = vand.u32 2147483647, %v88_v7 }
  0x1f   :  { %283 = vrcp.f32 %v89_v8  ;;  %v116_v19 = vand.u32 2147483648, %v89_v8  ;;  %vm110_vm2 = vweird.f32 %v89_v8  ;;  %v114_v21 = vand.u32 2147483647, %v89_v8 }
  0x20   :  { %v102_v24 = vor.u32 1.1754944e-38, %v101_v15  ;;  %vm100_vm5 = vcmp.eq.f32.partialorder %v99_v18, 8.507059e+37  ;;  %v141_v47 = vrot.slane %v140_v42, 1 }
  0x21   :  { %v117_v27 = vor.u32 1.1754944e-38, %v116_v19  ;;  %vm115_vm7 = vcmp.eq.f32.partialorder %v114_v21, 8.507059e+37 }
  0x22   :  { %v142_v52 = vadd.f32 %v141_v47, %v140_v42 }
  0x24   :  { %v282_v9 = vpop.eup %281 }
  0x25   :  { %v284_v12 = vpop.eup %283  ;;  %v91_v13 = vmul.f32 %v282_v9, %v88_v7  ;;  %vm96_vm1 = vweird.f32 %v282_v9 }
  0x26   :  { %v106_v16 = vmul.f32 %v284_v12, %v89_v8  ;;  %vm111_vm3 = vweird.f32 %v284_v12  ;;  %vm97_vm4 = vmor %vm95_vm0, %vm96_vm1 }
  0x27   :  { %v92_v17 = vsub.f32 1.0, %v91_v13  ;;  %vm112_vm6 = vmor %vm110_vm2, %vm111_vm3 }
  0x28   :  { %v107_v20 = vsub.f32 1.0, %v106_v16 }
  0x29   :  { %v93_v22 = vmul.f32 %v282_v9, %v92_v17 }
  0x2a   :  { %v108_v25 = vmul.f32 %v284_v12, %v107_v20 }
  0x2b   :  { %v94_v26 = vadd.f32 %v282_v9, %v93_v22 }
  0x2c   :  { %v109_v28 = vadd.f32 %v284_v12, %v108_v25 }
  0x2d   :  { %v98_v29 = vsel %vm97_vm4, %v282_v9, %v94_v26 }
  0x2e   :  { %v103_v31 = vsel %vm100_vm5, %v102_v24, %v98_v29  ;;  %v113_v32 = vsel %vm112_vm6, %v284_v12, %v109_v28 }
  0x2f   :  { %v118_v33 = vsel %vm115_vm7, %v117_v27, %v113_v32  ;;  %v120_v34 = vmul.f32 %v103_v31, %v80_v10 }
  0x30   :  { %v121_v35 = vmul.f32 %v118_v33, %v81_v11  ;;  %v129_v36 = vadd.f32 %v118_v33, %v103_v31 }
  0x32   :  { %v122_v38 = vadd.f32 %v121_v35, %v120_v34  ;;  %v130_v39 = vrot.slane %v129_v36, 4 }
  0x34   :  { %v123_v40 = vrot.slane %v122_v38, 4  ;;  %v131_v41 = vadd.f32 %v130_v39, %v129_v36 }
  0x36   :  { %v124_v43 = vadd.f32 %v123_v40, %v122_v38  ;;  %v132_v44 = vrot.slane %v131_v41, 2 }
  0x38   :  { %v125_v45 = vrot.slane %v124_v43, 2  ;;  %v133_v46 = vadd.f32 %v132_v44, %v131_v41 }
  0x3a   :  { %v126_v48 = vadd.f32 %v125_v45, %v124_v43  ;;  %v134_v49 = vrot.slane %v133_v46, 1 }
  0x3c   :  { %v127_v50 = vrot.slane %v126_v48, 1  ;;  %v135_v51 = vadd.f32 %v134_v49, %v133_v46 }
  0x3e   :  { %v128_v53 = vadd.f32 %v127_v50, %v126_v48 }
  0x40   :  { %v147_v55 = vsel %vm146_vm8, %v128_v53, %v135_v51 }
  0x41   :  { %v149_v56 = vsel %vm148_vm9, %v147_v55, %v142_v52 }
  0x42   :  { %v151_v57 = vadd.f32 %v150_v54, %v149_v56 }
  0x44   :  { %152 = vst [vmem:[%s419_s3] sm:$0x7] %v151_v57 }
  0x45 PF:  { %p269_p1 = scmp.ge.s32.totalorder %s416_s0, 2048 }
  0x47   :  { %156 = sbr.rel (%p269_p1) target bundleno = 128 (0x80), region = 29 }
  0x4c   :  { %v157_v58 = vld [vmem:[#allocation4] sm:$0xff]  ;;  %v158_v59 = vld [vmem:[#allocation4 + $0x8] sm:$0xff]  ;;  %v199_v60 = vlaneseq  ;;  %v214_v10 = vstv %s416_s0  ;;  %v159_v11 = vld [vmem:[#allocation6] sm:$0xff]  ;;  %vm247_vm4 = vcmask 1040384   ;;  %vm249_vm5 = vcmask 1041408  }
  0x4d   :  { %v270_v61 = vmul.f32 -1.442695, %v157_v58  ;;  %v271_v62 = vmul.f32 -1.442695, %v158_v59  ;;  %v160_v12 = vld [vmem:[#allocation6 + $0x8] sm:$0xff] }
  0x4e   :  { %v200_v63 = vshrl.u32 %v199_v60, 7  ;;  %v203_v1 = vand.u32 127, %v199_v60 }
  0x4f   :  { %285 = vpow2.f32 %v270_v61 }
  0x50   :  { %287 = vpow2.f32 %v271_v62  ;;  %v201_v0 = vadd.s32 8, %v200_v63  ;;  %v207_v2 = vmul.u32 128, %v200_v63  ;;  %v251_v62 = vld [vmem:[%s419_s3] sm:$0x7] }
  0x52   :  { %v208_v3 = vmul.u32 128, %v201_v0  ;;  %v212_v8 = vadd.s32 %v207_v2, %v203_v1 }
  0x54   :  { %v213_v9 = vadd.s32 %v208_v3, %v203_v1  ;;  %vm394_vm10 = vcmp.lt.s32.totalorder %v212_v8, %v214_v10 }
  0x55   :  { %v286_v4 = vpop.eup %285  ;;  %v219_v18 = vsel %vm394_vm10, %v159_v11, 0.0 }
  0x56   :  { %v288_v5 = vpop.eup %287  ;;  %v167_v6 = vadd.f32 1.0, %v286_v4  ;;  %vm398_vm11 = vcmp.lt.s32.totalorder %v213_v9, %v214_v10 }
  0x57   :  { %v168_v7 = vadd.f32 1.0, %v288_v5  ;;  %v220_v19 = vsel %vm398_vm11, %v160_v12, 0.0 }
  0x58   :  { %289 = vrcp.f32 %v167_v6  ;;  %vm174_vm12 = vweird.f32 %v167_v6  ;;  %v180_v20 = vand.u32 2147483648, %v167_v6  ;;  %v237_v22 = vadd.f32 %v220_v19, %v219_v18 }
  0x59   :  { %291 = vrcp.f32 %v168_v7  ;;  %v178_v24 = vand.u32 2147483647, %v167_v6  ;;  %v195_v25 = vand.u32 2147483648, %v168_v7  ;;  %vm189_vm14 = vweird.f32 %v168_v7 }
  0x5a   :  { %v193_v27 = vand.u32 2147483647, %v168_v7  ;;  %v181_v29 = vor.u32 1.1754944e-38, %v180_v20  ;;  %v238_v31 = vrot.slane %v237_v22, 4 }
  0x5b   :  { %vm179_vm1 = vcmp.eq.f32.partialorder %v178_v24, 8.507059e+37  ;;  %v196_v33 = vor.u32 1.1754944e-38, %v195_v25 }
  0x5c   :  { %vm194_vm3 = vcmp.eq.f32.partialorder %v193_v27, 8.507059e+37  ;;  %v239_v38 = vadd.f32 %v238_v31, %v237_v22 }
  0x5e   :  { %v290_v15 = vpop.eup %289  ;;  %v240_v45 = vrot.slane %v239_v38, 2 }
  0x5f   :  { %v292_v16 = vpop.eup %291  ;;  %v170_v17 = vmul.f32 %v290_v15, %v167_v6  ;;  %vm175_vm13 = vweird.f32 %v290_v15 }
  0x60   :  { %v185_v21 = vmul.f32 %v292_v16, %v168_v7  ;;  %vm190_vm15 = vweird.f32 %v292_v16  ;;  %vm176_vm0 = vmor %vm174_vm12, %vm175_vm13  ;;  %v241_v50 = vadd.f32 %v240_v45, %v239_v38 }
  0x61   :  { %v171_v23 = vsub.f32 1.0, %v170_v17  ;;  %vm191_vm2 = vmor %vm189_vm14, %vm190_vm15 }
  0x62   :  { %v186_v26 = vsub.f32 1.0, %v185_v21  ;;  %v242_v55 = vrot.slane %v241_v50, 1 }
  0x63   :  { %v172_v28 = vmul.f32 %v290_v15, %v171_v23 }
  0x64   :  { %v187_v30 = vmul.f32 %v292_v16, %v186_v26  ;;  %v243_v60 = vadd.f32 %v242_v55, %v241_v50 }
  0x65   :  { %v173_v32 = vadd.f32 %v290_v15, %v172_v28 }
  0x66   :  { %v188_v34 = vadd.f32 %v292_v16, %v187_v30 }
  0x67   :  { %v177_v35 = vsel %vm176_vm0, %v290_v15, %v173_v32 }
  0x68   :  { %v182_v36 = vsel %vm179_vm1, %v181_v29, %v177_v35  ;;  %v192_v37 = vsel %vm191_vm2, %v292_v16, %v188_v34 }
  0x69   :  { %v197_v39 = vsel %vm194_vm3, %v196_v33, %v192_v37  ;;  %v217_v40 = vsel %vm394_vm10, %v182_v36, 0.0 }
  0x6a   :  { %v218_v41 = vsel %vm398_vm11, %v197_v39, 0.0  ;;  %v221_v42 = vmul.f32 %v219_v18, %v217_v40 }
  0x6b   :  { %v222_v43 = vmul.f32 %v220_v19, %v218_v41  ;;  %v230_v44 = vadd.f32 %v218_v41, %v217_v40 }
  0x6d   :  { %v223_v46 = vadd.f32 %v222_v43, %v221_v42  ;;  %v231_v47 = vrot.slane %v230_v44, 4 }
  0x6f   :  { %v224_v48 = vrot.slane %v223_v46, 4  ;;  %v232_v49 = vadd.f32 %v231_v47, %v230_v44 }
  0x71   :  { %v225_v51 = vadd.f32 %v224_v48, %v223_v46  ;;  %v233_v52 = vrot.slane %v232_v49, 2 }
  0x73   :  { %v226_v53 = vrot.slane %v225_v51, 2  ;;  %v234_v54 = vadd.f32 %v233_v52, %v232_v49 }
  0x75   :  { %v227_v56 = vadd.f32 %v226_v53, %v225_v51  ;;  %v235_v57 = vrot.slane %v234_v54, 1 }
  0x77   :  { %v228_v58 = vrot.slane %v227_v56, 1  ;;  %v236_v59 = vadd.f32 %v235_v57, %v234_v54 }
  0x79   :  { %v229_v61 = vadd.f32 %v228_v58, %v227_v56 }
  0x7b   :  { %v248_v63 = vsel %vm247_vm4, %v229_v61, %v236_v59 }
  0x7c   :  { %v250_v0 = vsel %vm249_vm5, %v248_v63, %v243_v60 }
  0x7d   :  { %v252_v1 = vadd.f32 %v251_v62, %v250_v0 }
  0x7f   :  { %253 = vst [vmem:[%s419_s3] sm:$0x7] %v252_v1 }
  0x80 PF:  { %258 = vsyncpa [#allocation5], 1 }
  0x81   :  { %259 = vsyncpa [#allocation7], 1 }

</bundles_post_ra>
